<compile_context>
chip_gen: v7x
topology: tpu7x:2x2x1
jax: 0.10.0
libtpu: 0.0.40
codegen_flags: <defaults>
</compile_context>

<pallas_src>
import jax
import jax.numpy as jnp
from jax.experimental import pallas as pl
from jax.experimental.pallas import tpu as pltpu


def _round_up(x, m):
    return (x + m - 1) // m * m


def _pick_images_per_block(n, W, D, NCp, *, target_rows=512, vmem_budget=16 << 20):
    """Images per grid step: fill the MXU M dim (B*W >= 256 on v6e/v7x) and
    amortize per-step pipeline overhead, while the double-buffered block
    (bf16 input slab + f32 output tile) stays inside a conservative VMEM budget."""
    per_image = (W + 2) * D * 2 + W * NCp * 4          # bytes: input slab + output tile
    b_rows = max(1, target_rows // max(W, 1))
    b_mem = max(1, vmem_budget // (4 * per_image))     # 2x double buffers, in + out
    return int(max(1, min(n, b_rows, b_mem)))


def _net_kernel(x_ref, wb_ref, bb_ref, wh_ref, bh_ref, o_ref):
    """Fused conv(H,3)+bias+ReLU (backbone) -> linear (head) for a block of B images.

    x_ref  : (B, W+2, D)  bf16  width halo-padded feature slab, D = cin*H (unpadded)
    wb_ref : (Kp, Cp)     bf16  conv weight, 3 width-taps packed contiguously along K
    bb_ref : (1, Cp)      f32   conv bias
    wh_ref : (Cp, NCp)    bf16  head weight (VMEM resident)
    bh_ref : (1, NCp)     f32   head bias
    o_ref  : (B, W, NCp)  f32   lane-dense (NCp % 128 == 0) output tile
    """
    B, Wp2, D = x_ref.shape
    W = Wp2 - 2
    Kp = wb_ref.shape[0]
    NCp = o_ref.shape[2]
    M = B * W

    x = x_ref[...]                                     # single VMEM load of the slab

    # In-VMEM im2col: the 3 width taps of the (H, 3) conv, packed contiguously along
    # K so one wide-K MXU pass replaces three half-filled K passes.  The two
    # sublane-unaligned slices are formed exactly once per block.
    parts = [x[:, 0:W], x[:, 1:W + 1], x[:, 2:W + 2]]
    pad_k = Kp - 3 * D
    if pad_k:
        parts.append(jnp.zeros((B, W, pad_k), x.dtype))
    xk = jnp.concatenate(parts, axis=-1).reshape(M, Kp)          # (B*W, Kp) bf16

    acc = jnp.dot(xk, wb_ref[...], preferred_element_type=jnp.float32)   # (M, Cp)
    feat = jnp.maximum(acc + bb_ref[...], 0.0)                   # f32 epilogue (v5e-safe)
    out = jnp.dot(feat.astype(wh_ref.dtype), wh_ref[...],
                  preferred_element_type=jnp.float32)            # (M, NCp)
    o_ref[...] = (out + bh_ref[...]).reshape(B, W, NCp)


def fused_net(x_slab, w_backbone, b_backbone, w_head, b_head, *, W, images_per_block):
    """x_slab: (n_pad, W+2, D) bf16; returns (n_pad, W, NCp) f32 (NCp lane-padded)."""
    n_pad, Wp2, D = x_slab.shape
    Kp, Cp = w_backbone.shape
    NCp = w_head.shape[1]
    B = images_per_block
    assert n_pad % B == 0
    return pl.pallas_call(
        _net_kernel,
        out_shape=jax.ShapeDtypeStruct((n_pad, W, NCp), jnp.float32),
        grid=(n_pad // B,),
        in_specs=[
            pl.BlockSpec((B, Wp2, D), lambda i: (i, 0, 0)),    # B-image halo slab
            pl.BlockSpec((Kp, Cp), lambda i: (0, 0)),          # resident packed conv weight
            pl.BlockSpec((1, Cp), lambda i: (0, 0)),           # resident conv bias
            pl.BlockSpec((Cp, NCp), lambda i: (0, 0)),         # resident head weight
            pl.BlockSpec((1, NCp), lambda i: (0, 0)),          # resident head bias
        ],
        out_specs=pl.BlockSpec((B, W, NCp), lambda i: (i, 0, 0)),
        compiler_params=pltpu.CompilerParams(
            dimension_semantics=("parallel",)),                # 2 TCs split blocks on v7x
    )(x_slab, w_backbone, b_backbone, w_head, b_head)


def net_forward(x, params, mask=None, *, return_padded=False):
    """Equivalent of Net.forward: backbone(x, mask) -> rearrange 'n c w -> n w c' -> head."""
    n, cin, H, W = x.shape
    if mask is not None:
        # TODO(synk): the real backbone/head are injected nn.Modules; this synthetic
        # backbone applies the width mask to the raw input columns before the conv.
        x = x * mask[:, None, None, :].astype(x.dtype)

    D = cin * H
    # Cast to bf16 BEFORE the transpose / halo pad: wrapper HBM passes move half the bytes.
    xb = x.astype(jnp.bfloat16)
    xw = jnp.transpose(xb, (0, 3, 1, 2)).reshape(n, W, D)      # 'n c h w' -> 'n w (c h)'
    x_slab = jnp.pad(xw, ((0, 0), (1, 1), (0, 0)))             # width halo (conv pad=1)

    NCp = params["w_head"].shape[1]
    B = _pick_images_per_block(n, W, D, NCp)
    n_pad = pl.cdiv(n, B) * B
    if n_pad != n:
        x_slab = jnp.pad(x_slab, ((0, n_pad - n), (0, 0), (0, 0)))

    out = fused_net(x_slab, params["w_backbone"], params["b_backbone"],
                    params["w_head"], params["b_head"], W=W, images_per_block=B)
    if return_padded:
        return out[:n]                                  # (n, W, NCp): index classes lazily
    return out[:n, :, :params["num_classes"]]           # (n, w, classes) module semantics


def init_params(key, cin, H, C, num_classes):
    """Returns (kernel_params packed/zero-padded/bf16, raw f32 params for reference)."""
    D = cin * H
    Kp = _round_up(3 * D, 128)       # 3 conv taps packed contiguously, then lane-padded
    Cp = _round_up(C, 128)
    NCp = _round_up(num_classes, 128)
    k1, k2, k3, k4 = jax.random.split(key, 4)
    wb = jax.random.normal(k1, (3, D, C), jnp.float32) / jnp.sqrt(3.0 * D)
    bb = jax.random.normal(k2, (1, C), jnp.float32) * 0.01
    wh = jax.random.normal(k3, (C, num_classes), jnp.float32) / jnp.sqrt(1.0 * C)
    bh = jax.random.normal(k4, (1, num_classes), jnp.float32) * 0.01

    kernel_params = {
        # (3, D, C) -> (3*D, C) contiguous K packing, zero-padded to (Kp, Cp), bf16.
        "w_backbone": jnp.pad(wb.reshape(3 * D, C),
                              ((0, Kp - 3 * D), (0, Cp - C))).astype(jnp.bfloat16),
        "b_backbone": jnp.pad(bb, ((0, 0), (0, Cp - C))),
        "w_head": jnp.pad(wh, ((0, Cp - C), (0, NCp - num_classes))).astype(jnp.bfloat16),
        "b_head": jnp.pad(bh, ((0, 0), (0, NCp - num_classes))),
        "num_classes": num_classes,
    }
    raw_params = (wb, bb, wh, bh)
    return kernel_params, raw_params


if __name__ == "__main__":
    key = jax.random.PRNGKey(0)
    kx, kp, km = jax.random.split(key, 3)

    n, cin, H, W = 2, 4, 16, 16
    C, num_classes = 32, 16

    x = jax.random.normal(kx, (n, cin, H, W), jnp.float32)
    mask = (jax.random.uniform(km, (n, W)) > 0.25).astype(jnp.float32)
    params, raw = init_params(kp, cin, H, C, num_classes)

    out = net_forward(x, params, mask=mask)
    out = jax.block_until_ready(out)

    # pure-JAX reference (same bf16 MXU inputs, f32 accumulation, no padding)
    wb, bb, wh, bh = raw
    xm = x * mask[:, None, None, :]
    xw = jnp.transpose(xm, (0, 3, 1, 2)).reshape(n, W, cin * H)
    xpad = jnp.pad(xw, ((0, 0), (1, 1), (0, 0))).astype(jnp.bfloat16)
    acc = jnp.zeros((n, W, C), jnp.float32)
    for kw in range(3):
        acc = acc + jnp.einsum("nwd,dc->nwc", xpad[:, kw:kw + W, :],
                               wb[kw].astype(jnp.bfloat16),
                               preferred_element_type=jnp.float32)
    feat_ref = jnp.maximum(acc + bb, 0.0)
    out_ref = jnp.einsum("nwc,ck->nwk", feat_ref.astype(jnp.bfloat16),
                         wh.astype(jnp.bfloat16),
                         preferred_element_type=jnp.float32) + bh

    assert out.shape == (n, W, num_classes)
    assert jnp.allclose(out, out_ref, atol=1e-2, rtol=1e-2), \
        float(jnp.max(jnp.abs(out - out_ref)))

    print("KERNEL_OK")
</pallas_src>

<mosaic_0001>
module attributes {stable_mosaic.version = 11 : i64} {
  func.func @_net_kernel(%arg0: i32, %arg1: memref<2x18x64xbf16, #tpu.memory_space<vmem>>, %arg2: memref<256x128xbf16, #tpu.memory_space<vmem>>, %arg3: memref<1x128xf32, #tpu.memory_space<vmem>>, %arg4: memref<128x128xbf16, #tpu.memory_space<vmem>>, %arg5: memref<1x128xf32, #tpu.memory_space<vmem>>, %arg6: memref<2x16x128xf32, #tpu.memory_space<vmem>>) attributes {dimension_semantics = [#tpu.dimension_semantics<parallel>], iteration_bounds = array<i64: 1>, scalar_prefetch = 0 : i64, scratch_operands = 0 : i64, tpu.core_type = #tpu.core_type<tc>, window_params = [{transform_indices = @transform_0, window_bounds = array<i64: 2, 18, 64>}, {pipeline_mode = #tpu.pipeline_mode<synchronous>, transform_indices = @transform_1, window_bounds = array<i64: 256, 128>}, {pipeline_mode = #tpu.pipeline_mode<synchronous>, transform_indices = @transform_2, window_bounds = array<i64: 1, 128>}, {pipeline_mode = #tpu.pipeline_mode<synchronous>, transform_indices = @transform_3, window_bounds = array<i64: 128, 128>}, {pipeline_mode = #tpu.pipeline_mode<synchronous>, transform_indices = @transform_4, window_bounds = array<i64: 1, 128>}, {transform_indices = @transform_5, window_bounds = array<i64: 2, 16, 128>}]} {
    %c0 = arith.constant 0 : index
    %c0_0 = arith.constant 0 : index
    %c0_1 = arith.constant 0 : index
    %0 = vector.load %arg1[%c0, %c0_0, %c0_1] : memref<2x18x64xbf16, #tpu.memory_space<vmem>>, vector<2x18x64xbf16>
    %1 = vector.extract_strided_slice %0 {offsets = [0, 0, 0], sizes = [2, 16, 64], strides = [1, 1, 1]} : vector<2x18x64xbf16> to vector<2x16x64xbf16>
    %2 = vector.extract_strided_slice %0 {offsets = [0, 1, 0], sizes = [2, 16, 64], strides = [1, 1, 1]} : vector<2x18x64xbf16> to vector<2x16x64xbf16>
    %3 = vector.extract_strided_slice %0 {offsets = [0, 2, 0], sizes = [2, 16, 64], strides = [1, 1, 1]} : vector<2x18x64xbf16> to vector<2x16x64xbf16>
    %cst = arith.constant 0.000000e+00 : bf16
    %4 = vector.broadcast %cst : bf16 to vector<2x16x64xbf16>
    %5 = tpu.concatenate %1, %2, %3, %4 in 2 : vector<2x16x64xbf16>, vector<2x16x64xbf16>, vector<2x16x64xbf16>, vector<2x16x64xbf16> -> vector<2x16x256xbf16>
    %6 = vector.shape_cast %5 : vector<2x16x256xbf16> to vector<32x256xbf16>
    %c0_2 = arith.constant 0 : index
    %c0_3 = arith.constant 0 : index
    %7 = vector.load %arg2[%c0_2, %c0_3] : memref<256x128xbf16, #tpu.memory_space<vmem>>, vector<256x128xbf16>
    %cst_4 = arith.constant dense<0.000000e+00> : vector<32x128xf32>
    %8 = tpu.matmul %6, %7, %cst_4 {dimension_numbers = #tpu.dot_dimension_numbers<[1], [0], [0], [1], [0, 0, 1, 1], [], []>} : vector<32x256xbf16>, vector<256x128xbf16>, vector<32x128xf32> -> vector<32x128xf32>
    %c0_5 = arith.constant 0 : index
    %c0_6 = arith.constant 0 : index
    %9 = vector.load %arg3[%c0_5, %c0_6] : memref<1x128xf32, #tpu.memory_space<vmem>>, vector<1x128xf32>
    %10 = vector.broadcast %9 : vector<1x128xf32> to vector<32x128xf32>
    %11 = arith.addf %8, %10 : vector<32x128xf32>
    %cst_7 = arith.constant 0.000000e+00 : f32
    %12 = vector.broadcast %cst_7 : f32 to vector<32x128xf32>
    %13 = arith.maximumf %11, %12 : vector<32x128xf32>
    %14 = arith.truncf %13 : vector<32x128xf32> to vector<32x128xbf16>
    %c0_8 = arith.constant 0 : index
    %c0_9 = arith.constant 0 : index
    %15 = vector.load %arg4[%c0_8, %c0_9] : memref<128x128xbf16, #tpu.memory_space<vmem>>, vector<128x128xbf16>
    %cst_10 = arith.constant dense<0.000000e+00> : vector<32x128xf32>
    %16 = tpu.matmul %14, %15, %cst_10 {dimension_numbers = #tpu.dot_dimension_numbers<[1], [0], [0], [1], [0, 0, 1, 1], [], []>} : vector<32x128xbf16>, vector<128x128xbf16>, vector<32x128xf32> -> vector<32x128xf32>
    %c0_11 = arith.constant 0 : index
    %c0_12 = arith.constant 0 : index
    %17 = vector.load %arg5[%c0_11, %c0_12] : memref<1x128xf32, #tpu.memory_space<vmem>>, vector<1x128xf32>
    %18 = vector.broadcast %17 : vector<1x128xf32> to vector<32x128xf32>
    %19 = arith.addf %16, %18 : vector<32x128xf32>
    %20 = vector.shape_cast %19 : vector<32x128xf32> to vector<2x16x128xf32>
    %c0_13 = arith.constant 0 : index
    %c0_14 = arith.constant 0 : index
    %c0_15 = arith.constant 0 : index
    %21 = vector.load %arg6[%c0_13, %c0_14, %c0_15] : memref<2x16x128xf32, #tpu.memory_space<vmem>>, vector<2x16x128xf32>
    tpu.vector_store %arg6[%c0_13, %c0_14, %c0_15], %20 {strides = array<i32>} : memref<2x16x128xf32, #tpu.memory_space<vmem>>, vector<2x16x128xf32>,
    return
  }
  func.func @transform_0(%arg0: i32) -> (i32, i32, i32) {
    %c0_i32 = arith.constant 0 : i32
    %c0_i32_0 = arith.constant 0 : i32
    %c0_i32_1 = arith.constant 0 : i32
    return %arg0, %c0_i32, %c0_i32_0 : i32, i32, i32
  }
  func.func @transform_1(%arg0: i32) -> (i32, i32) {
    %c0_i32 = arith.constant 0 : i32
    %c0_i32_0 = arith.constant 0 : i32
    %c0_i32_1 = arith.constant 0 : i32
    return %c0_i32, %c0_i32_0 : i32, i32
  }
  func.func @transform_2(%arg0: i32) -> (i32, i32) {
    %c0_i32 = arith.constant 0 : i32
    %c0_i32_0 = arith.constant 0 : i32
    %c0_i32_1 = arith.constant 0 : i32
    return %c0_i32, %c0_i32_0 : i32, i32
  }
  func.func @transform_3(%arg0: i32) -> (i32, i32) {
    %c0_i32 = arith.constant 0 : i32
    %c0_i32_0 = arith.constant 0 : i32
    %c0_i32_1 = arith.constant 0 : i32
    return %c0_i32, %c0_i32_0 : i32, i32
  }
  func.func @transform_4(%arg0: i32) -> (i32, i32) {
    %c0_i32 = arith.constant 0 : i32
    %c0_i32_0 = arith.constant 0 : i32
    %c0_i32_1 = arith.constant 0 : i32
    return %c0_i32, %c0_i32_0 : i32, i32
  }
  func.func @transform_5(%arg0: i32) -> (i32, i32, i32) {
    %c0_i32 = arith.constant 0 : i32
    %c0_i32_0 = arith.constant 0 : i32
    %c0_i32_1 = arith.constant 0 : i32
    return %arg0, %c0_i32, %c0_i32_0 : i32, i32, i32
  }
}

</mosaic_0001>

<bundles_post_ra>
// kernel: tpu_custom_call.1
= control target key start
LH: loop header
LB: loop body
LE: loop exit
PB: predicated region body
PF: predicated region fallthrough
CT: control target
= control target key end

     0   :  { %10 = vsyncpa [#allocation3], 0  ;;  %s768_s0 = inlined_call_operand.vmem [shape: bf16[2,18,64], index: 0, kind: input, shape index: {}]   ;;  %s769_s1 = inlined_call_operand.hbm [shape: bf16[256,128], index: 1, kind: input, shape index: {}]   ;;  %s770_s2 = inlined_call_operand.vmem [shape: f32[1,128], index: 2, kind: input, shape index: {}]   ;;  %s771_s3 = inlined_call_operand.hbm [shape: bf16[128,128], index: 3, kind: input, shape index: {}]   ;;  %s772_s4 = inlined_call_operand.vmem [shape: f32[1,128], index: 4, kind: input, shape index: {}]   ;;  %s773_s5 = inlined_call_operand.hbm [shape: f32[2,16,128], index: 5, kind: output, shape index: {}]  }
   0x1   :  { %11 = vsyncpa [#allocation6], 0 }
   0x2   :  { %12 = vsyncpa [#allocation4], 0  ;;  %s651_s18 = smov [#allocation2]   ;;  %s579_s22 = scalar_lea.hbm %s769_s1, 2048 }
   0x3   :  { %s20_s19 = sshll.u32 %s651_s18, 4  ;;  %p580_p0 = scmp.ne.s32.totalorder %s769_s1, %s579_s22  ;;  %s21_s19 = int_to_ptr.vmem [resolvable:$true] %s20_s19 }
   0x4   :  { %p583_p1 = scmp.lt.u32.totalorder %s579_s22, %s769_s1 }
   0x6   :  { %p585_p2 = pnand %p583_p1, %p580_p0 }
   0x8   :  { %588 = shalt.err (!%p585_p2)
}
   0x9   :  { %s589_s27 = scalar_lea.vmem %s21_s19, 2048  ;;  %p594_p4 = scmp.lt.s32.totalorder %s21_s19, %s21_s19 }
   0xa   :  { %p590_p3 = scmp.ne.s32.totalorder %s21_s19, %s589_s27  ;;  %p595_p5 = scmp.lt.s32.totalorder %s589_s27, %s589_s27 }
   0xc   :  { %p596_p6 = por %p595_p5, %p594_p4 }
   0xe   :  { %p597_p7 = pnand %p596_p6, %p590_p3 }
  0x10   :  { %600 = shalt.err (!%p597_p7)
}
  0x11   :  { %s652_s28 = smov 64   ;;  %s653_s29 = smov 4  }
  0x12   :  { %26 = dma.hbm_to_vmem [thread:$0]  %s769_s1, 2048, %s21_s19, [#allocation3], %s652_s28, %s652_s28, %s653_s29  }
  0x13   :  { %s654_s7 = smov [#allocation5]   ;;  %s601_s11 = scalar_lea.hbm %s771_s3, 1024 }
  0x14   :  { %s34_s8 = sshll.u32 %s654_s7, 4  ;;  %p602_p8 = scmp.ne.s32.totalorder %s771_s3, %s601_s11  ;;  %s35_s8 = int_to_ptr.vmem [resolvable:$true] %s34_s8 }
  0x15   :  { %p605_p9 = scmp.lt.u32.totalorder %s601_s11, %s771_s3 }
  0x17   :  { %p607_p10 = pnand %p605_p9, %p602_p8 }
  0x19   :  { %610 = shalt.err (!%p607_p10)
}
  0x1a   :  { %s611_s16 = scalar_lea.vmem %s35_s8, 1024  ;;  %p616_p12 = scmp.lt.s32.totalorder %s35_s8, %s35_s8 }
  0x1b   :  { %p612_p11 = scmp.ne.s32.totalorder %s35_s8, %s611_s16  ;;  %p617_p13 = scmp.lt.s32.totalorder %s611_s16, %s611_s16 }
  0x1d   :  { %p618_p0 = por %p617_p13, %p616_p12 }
  0x1f   :  { %p619_p1 = pnand %p618_p0, %p612_p11 }
  0x21   :  { %622 = shalt.err (!%p619_p1)
}
  0x22   :  { %40 = dma.hbm_to_vmem [thread:$0]  %s771_s3, 1024, %s35_s8, [#allocation6], %s652_s28, %s652_s28, %s653_s29  }
  0x23   :  { %645 = dma.done.wait [#allocation3], 2048  }
  0x24   :  { %646 = vsyncadd [#allocation3], 4294965248 }
  0x25   :  { %647 = dma.done.wait [#allocation6], 1024  }
  0x26   :  { %648 = vsyncadd [#allocation6], 4294966272  ;;  %vm72_vm0 = vsmask.f32 7424  ;;  %vm101_vm1 = vcmask 1046528   ;;  %v719_v0 = vld [vmem:[%s768_s0] sm:$0xff]  }
  0x27   :  { %v552_v1 = vld [vmem:[%s768_s0 + $0x8] ss:$0 sps:$4 sm:$0x11]   ;;  %v727_v2 = vld [vmem:[%s768_s0 + $0xc] sm:$0xff]   ;;  %vm108_vm2 = vcmask 523264   ;;  %v74_v3 = vshrl.u32 %v719_v0, 16 }
  0x28   :  { %v76_v4 = vshll.u32 %v719_v0, 16  ;;  %v81_v5 = vshll.u32 %v552_v1, 16  ;;  %v554_v6 = vld [vmem:[%s768_s0 + $0x14] ss:$0 sps:$4 sm:$0x11]   ;;  %v86_v7 = vshrl.u32 %v727_v2, 16 }
  0x29   :  { %v88_v8 = vshll.u32 %v727_v2, 16  ;;  %v93_v11 = vshll.u32 %v554_v6, 16  ;;  %v555_v12 = vld [vmem:[#allocation2 + $0x40] sm:$0xff]   ;;  %v557_v17 = vld [vmem:[#allocation2 + $0x48] sm:$0xff]   ;;  %v102_v20 = vrot.slane %v719_v0, 1  ;;  %v559_v22 = vld [vmem:[#allocation2 + $0x50] sm:$0xff]  }
  0x2a   :  { %v78_v9 = vrot.slane %v76_v4, 1  ;;  %v83_v10 = vrot.slane %v81_v5, 1  ;;  %v556_v14 = vld [vmem:[#allocation2] sm:$0xff]   ;;  %486 = vmatprep.subr.bf16.mxu0 %v555_v12  ;;  %v558_v19 = vld [vmem:[#allocation2 + $0x8] sm:$0xff]   ;;  %v103_v23 = vrot.slane %v552_v1, 1  ;;  %v105_v24 = vrot.slane %v727_v2, 1 }
  0x2b   :  { %v90_v13 = vrot.slane %v88_v8, 1  ;;  %v95_v16 = vrot.slane %v93_v11, 1  ;;  %487 = vmatpush3.bf16.msra.mxu0 %v556_v14  ;;  %v106_v27 = vrot.slane %v554_v6, 1  ;;  %v560_v28 = vld [vmem:[#allocation2 + $0x10] sm:$0xff]   ;;  %v561_v29 = vld [vmem:[#allocation2 + $0x58] sm:$0xff]   ;;  %v563_v32 = vld [vmem:[#allocation2 + $0x60] sm:$0xff]  }
  0x2c   :  { %v79_v15 = vor.u32 %v78_v9, %v74_v3  ;;  %488 = vmatprep.subr.bf16.mxu0 %v557_v17  ;;  %v104_v26 = vsel %vm101_vm1, %v102_v20, %v103_v23  ;;  %v562_v31 = vld [vmem:[#allocation2 + $0x18] sm:$0xff]   ;;  %v564_v33 = vld [vmem:[#allocation2 + $0x20] sm:$0xff]   ;;  %v565_v34 = vld [vmem:[#allocation2 + $0x68] sm:$0xff]   ;;  %s655_s27 = smov [#allocation7]  }
  0x2d   :  { %v91_v18 = vor.u32 %v90_v13, %v86_v7  ;;  %475 = vmatprep.mubr.msk.bf16.mxu0 %vm108_vm2, %v104_v26  ;;  %v107_v30 = vsel %vm101_vm1, %v105_v24, %v106_v27  ;;  %v571_v35 = vld [vmem:[#allocation5] sm:$0xff]   ;;  %v566_v36 = vld [vmem:[#allocation2 + $0x28] sm:$0xff]   ;;  %v567_v38 = vld [vmem:[#allocation2 + $0x70] sm:$0xff]  }
  0x2e   :  { %v84_v21 = vsel %vm72_vm0, %v79_v15, %v83_v10  ;;  %v572_v37 = vld [vmem:[#allocation5 + $0x8] sm:$0xff]   ;;  %524 = vmatprep.subr.bf16.mxu1 %v571_v35  ;;  %v573_v39 = vld [vmem:[#allocation5 + $0x10] sm:$0xff]   ;;  %v569_v41 = vld [vmem:[#allocation2 + $0x78] sm:$0xff]  }
  0x2f   :  { %97 = vrot.lane.b32.xlu0 %v84_v21, %s652_s28  ;;  %v96_v25 = vsel %vm72_vm0, %v91_v18, %v95_v16  ;;  %489 = vmatpush3.bf16.msra.mxu0 %v558_v19  ;;  %v568_v40 = vld [vmem:[#allocation2 + $0x30] sm:$0xff]   ;;  %v570_v42 = vld [vmem:[#allocation2 + $0x38] sm:$0xff]   ;;  %v575_v48 = vld [vmem:[#allocation5 + $0x20] sm:$0xff]  }
  0x30   :  { %490 = vmatprep.subr.bf16.mxu0 %v559_v22  ;;  %525 = vmatpush3.bf16.msra.mxu1 %v571_v35  ;;  %v574_v47 = vld [vmem:[#allocation5 + $0x18] sm:$0xff]   ;;  %v576_v49 = vld [vmem:[#allocation5 + $0x28] sm:$0xff]   ;;  %v577_v50 = vld [vmem:[#allocation5 + $0x30] sm:$0xff]  }
  0x31   :  { %526 = vmatprep.subr.bf16.mxu1 %v572_v37  ;;  %v578_v51 = vld [vmem:[#allocation5 + $0x38] sm:$0xff]   ;;  %v458_v54 = vld [vmem:[%s770_s2] ss:$0 sm:$0xff] }
  0x32   :  { %v477_v11 = vld [vmem:[%s772_s4] ss:$0 sm:$0xff] }
  0x33   :  { %99 = vrot.lane.b32.xlu0 %v96_v25, %s652_s28  ;;  %491 = vmatpush3.bf16.msra.mxu0 %v560_v28  ;;  %s441_s28 = sshll.u32 %s655_s27, 4  ;;  %s442_s28 = int_to_ptr.vmem [resolvable:$true] %s441_s28 }
  0x34   :  { %492 = vmatprep.subr.bf16.mxu0 %v561_v29  ;;  %527 = vmatpush3.bf16.msra.mxu1 %v572_v37  ;;  %s623_s29 = scalar_lea.vmem %s442_s28, 512  ;;  %p628_p3 = scmp.lt.s32.totalorder %s442_s28, %s442_s28 }
  0x35   :  { %528 = vmatprep.subr.bf16.mxu1 %v573_v39  ;;  %p624_p2 = scmp.ne.s32.totalorder %s442_s28, %s623_s29  ;;  %p629_p4 = scmp.lt.s32.totalorder %s623_s29, %s623_s29 }
  0x37   :  { %493 = vmatpush3.bf16.msra.mxu0 %v562_v31  ;;  %p630_p5 = por %p629_p4, %p628_p3 }
  0x38   :  { %494 = vmatprep.subr.bf16.mxu0 %v563_v32  ;;  %529 = vmatpush3.bf16.msra.mxu1 %v573_v39 }
  0x39   :  { %530 = vmatprep.subr.bf16.mxu1 %v574_v47  ;;  %p631_p6 = pnand %p630_p5, %p624_p2 }
  0x3b   :  { %495 = vmatpush3.bf16.msra.mxu0 %v564_v33 }
  0x3c   :  { %496 = vmatprep.subr.bf16.mxu0 %v565_v34  ;;  %531 = vmatpush3.bf16.msra.mxu1 %v574_v47 }
  0x3d   :  { %532 = vmatprep.subr.bf16.mxu1 %v575_v48 }
  0x3f   :  { %497 = vmatpush3.bf16.msra.mxu0 %v566_v36 }
  0x40   :  { %498 = vmatprep.subr.bf16.mxu0 %v567_v38  ;;  %533 = vmatpush3.bf16.msra.mxu1 %v575_v48 }
  0x41   :  { %534 = vmatprep.subr.bf16.mxu1 %v576_v49 }
  0x43   :  { %499 = vmatpush3.bf16.msra.mxu0 %v568_v40 }
  0x44   :  { %500 = vmatprep.subr.bf16.mxu0 %v569_v41  ;;  %535 = vmatpush3.bf16.msra.mxu1 %v576_v49 }
  0x45   :  { %536 = vmatprep.subr.bf16.mxu1 %v577_v50 }
  0x47   :  { %501 = vmatpush3.bf16.msra.mxu0 %v570_v42 }
  0x48   :  { %537 = vmatpush3.bf16.msra.mxu1 %v577_v50 }
  0x49   :  { %538 = vmatprep.subr.bf16.mxu1 %v578_v51 }
  0x4c   :  { %539 = vmatpush3.bf16.msra.mxu1 %v578_v51 }
  0xa1   :  { %v98_v43 = vpop.permute.xlu0 %97 }
  0xa2   :  { %v110_v44 = vsel %vm108_vm2, %v719_v0, %v98_v43 }
  0xa3   :  { %290 = vmatmul.mubr.bf16.vlgmr.msra.gmra.mrb[0].mxu0 %v110_v44 }
  0xa4   :  { %476 = vmatprep.mubr.msk.bf16.mxu0 %vm108_vm2, %v107_v30 }
  0xa5   :  { %v100_v45 = vpop.permute.xlu0 %99 }
  0xa6   :  { %v113_v46 = vsel %vm108_vm2, %v727_v2, %v100_v45 }
  0xab   :  { %298 = vmatmul.mubr.bf16.gmra.mrb[4].mxu0 %v113_v46 }
 0x176   :  { %v502_v52 = vpop.f32.mrb[0].mxu0 }
 0x177   :  { %v503_v53 = vpop.f32.mrb[1].mxu0 }
 0x178   :  { %v504_v55 = vadd.f32 %v503_v53, %v502_v52  ;;  %v505_v56 = vpop.f32.mrb[2].mxu0 }
 0x179   :  { %v506_v57 = vpop.f32.mrb[3].mxu0 }
 0x17a   :  { %v507_v58 = vadd.f32 %v506_v57, %v505_v56  ;;  %v292_v59 = vadd.f32 %v504_v55, %v458_v54 }
 0x17c   :  { %v295_v60 = vadd.f32 %v507_v58, %v458_v54  ;;  %v306_v62 = vmax.f32 %v292_v59, 0.0 }
 0x17e   :  { %v508_v61 = vpop.f32.mrb[4].mxu0  ;;  %v307_v63 = vmax.f32 %v295_v60, 0.0 }
 0x17f   :  { %v509_v0 = vpop.f32.mrb[5].mxu0 }
 0x180   :  { %v510_v1 = vadd.f32 %v509_v0, %v508_v61  ;;  %v511_v2 = vpop.f32.mrb[6].mxu0  ;;  %v310_v3 = vpack.c.bf16 %v307_v63, %v306_v62 }
 0x181   :  { %v512_v4 = vpop.f32.mrb[7].mxu0 }
 0x182   :  { %v300_v5 = vadd.f32 %v510_v1, %v458_v54  ;;  %v513_v6 = vadd.f32 %v512_v4, %v511_v2  ;;  %540 = vmatprep.mubr.bf16.mxu1 %v310_v3 }
 0x184   :  { %v303_v7 = vadd.f32 %v513_v6, %v458_v54  ;;  %v308_v8 = vmax.f32 %v300_v5, 0.0 }
 0x186   :  { %v309_v9 = vmax.f32 %v303_v7, 0.0 }
 0x188   :  { %v311_v10 = vpack.c.bf16 %v309_v9, %v308_v8 }
 0x18a   :  { %541 = vmatmul.mubr.bf16.vlgmr.msra.gmra.mrb[0].mxu1 %v311_v10 }
 0x25d   :  { %v542_v12 = vpop.f32.mrb[0].mxu1 }
 0x25e   :  { %v426_v13 = vadd.f32 %v542_v12, %v477_v11  ;;  %v417_v14 = vpop.f32.mrb[1].mxu1 }
 0x25f   :  { %v418_v15 = vadd.f32 %v477_v11, %v417_v14  ;;  %v543_v16 = vpop.f32.mrb[2].mxu1 }
 0x260   :  { %434 = vst [vmem:[#allocation7 + $0x10] sm:$0xff] %v426_v13  ;;  %v429_v17 = vadd.f32 %v543_v16, %v477_v11  ;;  %v420_v18 = vpop.f32.mrb[3].mxu1 }
 0x261   :  { %432 = vst [vmem:[#allocation7] sm:$0xff] %v418_v15  ;;  %v421_v19 = vadd.f32 %v477_v11, %v420_v18 }
 0x262   :  { %435 = vst [vmem:[#allocation7 + $0x18] sm:$0xff] %v429_v17 }
 0x263   :  { %433 = vst [vmem:[#allocation7 + $0x8] sm:$0xff] %v421_v19 }
 0x264   :  { %634 = shalt.err (!%p631_p6)
}
 0x265   :  { %s635_s6 = scalar_lea.hbm %s773_s5, 512 }
 0x266   :  { %p636_p7 = scmp.ne.s32.totalorder %s773_s5, %s635_s6  ;;  %p639_p8 = scmp.lt.u32.totalorder %s635_s6, %s773_s5 }
 0x268   :  { %p641_p9 = pnand %p639_p8, %p636_p7 }
 0x26a   :  { %644 = shalt.err (!%p641_p9)
}
 0x26b   :  { %s656_s11 = smov 128   ;;  %s657_s12 = smov 8  }
 0x26c   :  { %447 = dma.vmem_to_hbm [thread:$0]  %s442_s28, 512, %s773_s5, [#allocation4], %s656_s11, %s656_s11, %s657_s12  }
 0x26d   :  { %649 = dma.done.wait [#allocation4], 512  }
 0x26e   :  { %650 = vsyncadd [#allocation4], 4294966784 }
 0x26f   :  { %451 = vsyncpa [#allocation3], 1 }
 0x270   :  { %452 = vsyncpa [#allocation6], 1 }
 0x271   :  { %453 = vsyncpa [#allocation4], 1 }

</bundles_post_ra>
